<compile_context>
chip_gen: v5e
topology: v5e:2x2
jax: 0.10.0
libtpu: 0.0.40
codegen_flags: <defaults>
</compile_context>

<pallas_src>
import jax
import jax.numpy as jnp
from jax import lax
from jax.experimental import pallas as pl
from jax.experimental.pallas import tpu as pltpu

# The torch module uses a module-level `input_size = 0` placeholder; pick a
# small concrete feature count for the synthetic kernel.
INPUT_SIZE = 8      # F
H1 = 72             # logical fc1 width
H1_PAD = 128        # lane-aligned fc1 width (zero-padded, inert under ReLU)
H2 = 64             # fc2 width (full-dim block, no padding needed)
OUT = 1


def _round_up(n, m):
    return (n + m - 1) // m * m


def mlp_kernel(x_ref, w1_ref, b1_ref, w2_ref, b2_ref, w3t_ref, b3_ref, o_ref):
    # ---- fc1 + ReLU: bf16 MXU operands, f32 accumulate, f32 elementwise ----
    x = x_ref[...].astype(jnp.bfloat16)                                # (TB, F)
    h1 = jnp.dot(x, w1_ref[...], preferred_element_type=jnp.float32)   # (TB, 128)
    h1 = jnp.maximum(h1 + b1_ref[...], 0.0)

    # ---- fc2 + ReLU ----
    h2 = jnp.dot(h1.astype(jnp.bfloat16), w2_ref[...],
                 preferred_element_type=jnp.float32)                   # (TB, 64)
    h2 = jnp.maximum(h2 + b2_ref[...], 0.0)

    # ---- fc3 + sigmoid, emitted lane-dense ----
    # w3t is (1, 64) (torch (out, in) layout).  Contract both last dims:
    # (1, 64) . (TB, 64)^T -> (1, TB): the batch lands on the 128-lane axis so
    # the store is a wide unmasked vst instead of TB/8 one-lane masked stores.
    z = lax.dot_general(w3t_ref[...], h2.astype(jnp.bfloat16),
                        dimension_numbers=(((1,), (1,)), ((), ())),
                        preferred_element_type=jnp.float32)            # (1, TB)
    z = z + b3_ref[...]                                                # (1,1) bcast
    o_ref[...] = jax.nn.sigmoid(z)[None].astype(o_ref.dtype)           # (1,1,TB)


def salary_predictor_forward(x, params, *, tile_b=1024):
    """x: (B, INPUT_SIZE) float32 -> (B, 1) float32 (same semantics as the torch forward)."""
    w1, b1, w2, b2, w3t, b3 = params
    B, F = x.shape

    # Tile the batch; pad B up to a multiple of the tile so the grid is exact.
    tile_b = min(tile_b, _round_up(max(B, 8), 8))
    b_pad = _round_up(B, tile_b)
    if b_pad != B:
        x = jnp.pad(x, ((0, b_pad - B), (0, 0)))
    n_tiles = b_pad // tile_b

    flops = 2 * b_pad * (F * H1_PAD + H1_PAD * H2 + H2 * OUT)
    bytes_accessed = (b_pad * F * 4 + b_pad * 4                       # x in, out
                      + 2 * (F * H1_PAD + H1_PAD * H2 + H2)           # bf16 weights
                      + 4 * (H1_PAD + H2 + 1))                        # f32 biases

    out = pl.pallas_call(
        mlp_kernel,
        out_shape=jax.ShapeDtypeStruct((n_tiles, 1, tile_b), jnp.float32),
        grid=(n_tiles,),
        in_specs=[
            # Batch-tiled input: double-buffered by the Pallas pipeline.
            pl.BlockSpec((tile_b, F), lambda i: (i, 0)),
            # Weights / biases: constant index_map -> DMA'd once, VMEM-resident.
            pl.BlockSpec(w1.shape, lambda i: (0, 0)),
            pl.BlockSpec(b1.shape, lambda i: (0, 0)),
            pl.BlockSpec(w2.shape, lambda i: (0, 0)),
            pl.BlockSpec(b2.shape, lambda i: (0, 0)),
            pl.BlockSpec(w3t.shape, lambda i: (0, 0)),
            pl.BlockSpec(b3.shape, lambda i: (0, 0)),
        ],
        out_specs=pl.BlockSpec((1, 1, tile_b), lambda i: (i, 0, 0)),
        compiler_params=pltpu.CompilerParams(
            dimension_semantics=("parallel",),   # batch tiles shard across v7x's 2 TCs
            vmem_limit_bytes=32 * 1024 * 1024,   # generous but within every gen's budget
        ),
        cost_estimate=pl.CostEstimate(
            flops=flops, transcendentals=b_pad, bytes_accessed=bytes_accessed),
    )(x, w1, b1, w2, b2, w3t, b3)

    # (n_tiles, 1, tile_b) flattens in batch order; drop the padded rows.
    return out.reshape(-1)[:B].reshape(B, OUT)


def init_params(key):
    """torch nn.Linear default init: U[-1/sqrt(fan_in), +1/sqrt(fan_in)].
    Returns (kernel_params, reference_params)."""
    def linear(k, fan_in, fan_out):
        kw, kb = jax.random.split(k)
        bound = 1.0 / jnp.sqrt(jnp.float32(fan_in))
        w = jax.random.uniform(kw, (fan_in, fan_out), jnp.float32, -bound, bound)
        b = jax.random.uniform(kb, (1, fan_out), jnp.float32, -bound, bound)
        return w, b

    k1, k2, k3 = jax.random.split(key, 3)
    w1, b1 = linear(k1, INPUT_SIZE, H1)   # (8, 72), (1, 72)
    w2, b2 = linear(k2, H1, H2)           # (72, 64), (1, 64)
    w3, b3 = linear(k3, H2, OUT)          # (64, 1), (1, 1)

    # Kernel params: zero-pad the 72-wide dim to 128 lanes (inert: padded b1
    # lanes and padded w2 rows are zero), bf16 matmul operands, f32 biases.
    w1_p = jnp.zeros((INPUT_SIZE, H1_PAD), jnp.float32).at[:, :H1].set(w1).astype(jnp.bfloat16)
    b1_p = jnp.zeros((1, H1_PAD), jnp.float32).at[:, :H1].set(b1)
    w2_p = jnp.zeros((H1_PAD, H2), jnp.float32).at[:H1, :].set(w2).astype(jnp.bfloat16)
    b2_p = b2
    w3t = w3.T.astype(jnp.bfloat16)       # (1, 64): torch (out, in) layout
    b3_p = b3                             # (1, 1)

    kernel_params = (w1_p, b1_p, w2_p, b2_p, w3t, b3_p)
    ref_params = (w1, b1, w2, b2, w3, b3)
    return kernel_params, ref_params


def reference_forward(x, ref_params):
    w1, b1, w2, b2, w3, b3 = ref_params
    h1 = jnp.maximum(x @ w1 + b1, 0.0)
    h2 = jnp.maximum(h1 @ w2 + b2, 0.0)
    return jax.nn.sigmoid(h2 @ w3 + b3)


if __name__ == "__main__":
    key = jax.random.PRNGKey(0)
    kx, kp = jax.random.split(key)

    batch = 256
    x = jax.random.normal(kx, (batch, INPUT_SIZE), jnp.float32)
    kernel_params, ref_params = init_params(kp)

    # tile_b=128 keeps shapes small while still exercising a 2-step grid.
    out = salary_predictor_forward(x, kernel_params, tile_b=128)
    out = jax.block_until_ready(out)

    ref = reference_forward(x, ref_params)
    assert out.shape == (batch, OUT)
    # bf16 MXU operands (f32 accumulation) -> small deviation from the f32 reference.
    assert jnp.allclose(out, ref, atol=2e-2, rtol=2e-2), "mismatch vs JAX reference"

    print("KERNEL_OK")
</pallas_src>

<mosaic_0001>
module attributes {stable_mosaic.version = 11 : i64} {
  func.func @mlp_kernel(%arg0: i32, %arg1: memref<128x8xf32, #tpu.memory_space<vmem>>, %arg2: memref<8x128xbf16, #tpu.memory_space<vmem>>, %arg3: memref<1x128xf32, #tpu.memory_space<vmem>>, %arg4: memref<128x64xbf16, #tpu.memory_space<vmem>>, %arg5: memref<1x64xf32, #tpu.memory_space<vmem>>, %arg6: memref<1x64xbf16, #tpu.memory_space<vmem>>, %arg7: memref<1x1xf32, #tpu.memory_space<vmem>>, %arg8: memref<1x1x128xf32, #tpu.memory_space<vmem>>) attributes {dimension_semantics = [#tpu.dimension_semantics<parallel>], iteration_bounds = array<i64: 2>, scalar_prefetch = 0 : i64, scratch_operands = 0 : i64, tpu.core_type = #tpu.core_type<tc>, window_params = [{transform_indices = @transform_0, window_bounds = array<i64: 128, 8>}, {pipeline_mode = #tpu.pipeline_mode<synchronous>, transform_indices = @transform_1, window_bounds = array<i64: 8, 128>}, {pipeline_mode = #tpu.pipeline_mode<synchronous>, transform_indices = @transform_2, window_bounds = array<i64: 1, 128>}, {pipeline_mode = #tpu.pipeline_mode<synchronous>, transform_indices = @transform_3, window_bounds = array<i64: 128, 64>}, {pipeline_mode = #tpu.pipeline_mode<synchronous>, transform_indices = @transform_4, window_bounds = array<i64: 1, 64>}, {pipeline_mode = #tpu.pipeline_mode<synchronous>, transform_indices = @transform_5, window_bounds = array<i64: 1, 64>}, {pipeline_mode = #tpu.pipeline_mode<synchronous>, transform_indices = @transform_6, window_bounds = array<i64: 1, 1>}, {transform_indices = @transform_7, window_bounds = array<i64: 1, 1, 128>}]} {
    %c0 = arith.constant 0 : index
    %c0_0 = arith.constant 0 : index
    %0 = vector.load %arg1[%c0, %c0_0] : memref<128x8xf32, #tpu.memory_space<vmem>>, vector<128x8xf32>
    %1 = arith.truncf %0 : vector<128x8xf32> to vector<128x8xbf16>
    %c0_1 = arith.constant 0 : index
    %c0_2 = arith.constant 0 : index
    %2 = vector.load %arg2[%c0_1, %c0_2] : memref<8x128xbf16, #tpu.memory_space<vmem>>, vector<8x128xbf16>
    %cst = arith.constant dense<0.000000e+00> : vector<128x128xf32>
    %3 = tpu.matmul %1, %2, %cst {dimension_numbers = #tpu.dot_dimension_numbers<[1], [0], [0], [1], [0, 0, 1, 1], [], []>} : vector<128x8xbf16>, vector<8x128xbf16>, vector<128x128xf32> -> vector<128x128xf32>
    %c0_3 = arith.constant 0 : index
    %c0_4 = arith.constant 0 : index
    %4 = vector.load %arg3[%c0_3, %c0_4] : memref<1x128xf32, #tpu.memory_space<vmem>>, vector<1x128xf32>
    %5 = vector.broadcast %4 : vector<1x128xf32> to vector<128x128xf32>
    %6 = arith.addf %3, %5 : vector<128x128xf32>
    %cst_5 = arith.constant 0.000000e+00 : f32
    %7 = vector.broadcast %cst_5 : f32 to vector<128x128xf32>
    %8 = arith.maximumf %6, %7 : vector<128x128xf32>
    %9 = arith.truncf %8 : vector<128x128xf32> to vector<128x128xbf16>
    %c0_6 = arith.constant 0 : index
    %c0_7 = arith.constant 0 : index
    %10 = vector.load %arg4[%c0_6, %c0_7] : memref<128x64xbf16, #tpu.memory_space<vmem>>, vector<128x64xbf16>
    %cst_8 = arith.constant dense<0.000000e+00> : vector<128x64xf32>
    %11 = tpu.matmul %9, %10, %cst_8 {dimension_numbers = #tpu.dot_dimension_numbers<[1], [0], [0], [1], [0, 0, 1, 1], [], []>} : vector<128x128xbf16>, vector<128x64xbf16>, vector<128x64xf32> -> vector<128x64xf32>
    %c0_9 = arith.constant 0 : index
    %c0_10 = arith.constant 0 : index
    %12 = vector.load %arg5[%c0_9, %c0_10] : memref<1x64xf32, #tpu.memory_space<vmem>>, vector<1x64xf32>
    %13 = vector.broadcast %12 : vector<1x64xf32> to vector<128x64xf32>
    %14 = arith.addf %11, %13 : vector<128x64xf32>
    %cst_11 = arith.constant 0.000000e+00 : f32
    %15 = vector.broadcast %cst_11 : f32 to vector<128x64xf32>
    %16 = arith.maximumf %14, %15 : vector<128x64xf32>
    %c0_12 = arith.constant 0 : index
    %c0_13 = arith.constant 0 : index
    %17 = vector.load %arg6[%c0_12, %c0_13] : memref<1x64xbf16, #tpu.memory_space<vmem>>, vector<1x64xbf16>
    %18 = arith.truncf %16 : vector<128x64xf32> to vector<128x64xbf16>
    %cst_14 = arith.constant dense<0.000000e+00> : vector<1x128xf32>
    %19 = tpu.matmul %17, %18, %cst_14 {dimension_numbers = #tpu.dot_dimension_numbers<[1], [1], [0], [0], [0, 0, 1, 0], [], []>} : vector<1x64xbf16>, vector<128x64xbf16>, vector<1x128xf32> -> vector<1x128xf32>
    %c0_15 = arith.constant 0 : index
    %c0_16 = arith.constant 0 : index
    %20 = vector.load %arg7[%c0_15, %c0_16] : memref<1x1xf32, #tpu.memory_space<vmem>>, vector<1x1xf32>
    %21 = vector.broadcast %20 : vector<1x1xf32> to vector<1x128xf32>
    %22 = arith.addf %19, %21 : vector<1x128xf32>
    %23 = arith.negf %22 : vector<1x128xf32>
    %24 = math.exp %23 : vector<1x128xf32>
    %cst_17 = arith.constant 1.000000e+00 : f32
    %25 = vector.broadcast %cst_17 : f32 to vector<1x128xf32>
    %26 = arith.addf %25, %24 : vector<1x128xf32>
    %27 = arith.divf %25, %26 : vector<1x128xf32>
    %28 = vector.shape_cast %27 : vector<1x128xf32> to vector<1x1x128xf32>
    %c0_18 = arith.constant 0 : index
    %c0_19 = arith.constant 0 : index
    %c0_20 = arith.constant 0 : index
    %29 = vector.load %arg8[%c0_18, %c0_19, %c0_20] : memref<1x1x128xf32, #tpu.memory_space<vmem>>, vector<1x1x128xf32>
    tpu.vector_store %arg8[%c0_18, %c0_19, %c0_20], %28 {strides = array<i32>} : memref<1x1x128xf32, #tpu.memory_space<vmem>>, vector<1x1x128xf32>,
    return
  }
  func.func @transform_0(%arg0: i32) -> (i32, i32) {
    %c0_i32 = arith.constant 0 : i32
    %c0_i32_0 = arith.constant 0 : i32
    return %arg0, %c0_i32 : i32, i32
  }
  func.func @transform_1(%arg0: i32) -> (i32, i32) {
    %c0_i32 = arith.constant 0 : i32
    %c0_i32_0 = arith.constant 0 : i32
    %c0_i32_1 = arith.constant 0 : i32
    return %c0_i32, %c0_i32_0 : i32, i32
  }
  func.func @transform_2(%arg0: i32) -> (i32, i32) {
    %c0_i32 = arith.constant 0 : i32
    %c0_i32_0 = arith.constant 0 : i32
    %c0_i32_1 = arith.constant 0 : i32
    return %c0_i32, %c0_i32_0 : i32, i32
  }
  func.func @transform_3(%arg0: i32) -> (i32, i32) {
    %c0_i32 = arith.constant 0 : i32
    %c0_i32_0 = arith.constant 0 : i32
    %c0_i32_1 = arith.constant 0 : i32
    return %c0_i32, %c0_i32_0 : i32, i32
  }
  func.func @transform_4(%arg0: i32) -> (i32, i32) {
    %c0_i32 = arith.constant 0 : i32
    %c0_i32_0 = arith.constant 0 : i32
    %c0_i32_1 = arith.constant 0 : i32
    return %c0_i32, %c0_i32_0 : i32, i32
  }
  func.func @transform_5(%arg0: i32) -> (i32, i32) {
    %c0_i32 = arith.constant 0 : i32
    %c0_i32_0 = arith.constant 0 : i32
    %c0_i32_1 = arith.constant 0 : i32
    return %c0_i32, %c0_i32_0 : i32, i32
  }
  func.func @transform_6(%arg0: i32) -> (i32, i32) {
    %c0_i32 = arith.constant 0 : i32
    %c0_i32_0 = arith.constant 0 : i32
    %c0_i32_1 = arith.constant 0 : i32
    return %c0_i32, %c0_i32_0 : i32, i32
  }
  func.func @transform_7(%arg0: i32) -> (i32, i32, i32) {
    %c0_i32 = arith.constant 0 : i32
    %c0_i32_0 = arith.constant 0 : i32
    %c0_i32_1 = arith.constant 0 : i32
    return %arg0, %c0_i32, %c0_i32_0 : i32, i32, i32
  }
}

</mosaic_0001>

<bundles_post_ra>
// kernel: tpu_custom_call.1
= control target key start
LH: loop header
LB: loop body
LE: loop exit
PB: predicated region body
PF: predicated region fallthrough
CT: control target
= control target key end

     0   :  { %s1069_s0 = inlined_call_operand.vmem [shape: f32[256,8], index: 0, kind: input, shape index: {}]   ;;  %s1070_s1 = inlined_call_operand.vmem [shape: bf16[8,128], index: 1, kind: input, shape index: {}]   ;;  %s1071_s2 = inlined_call_operand.vmem [shape: f32[1,128], index: 2, kind: input, shape index: {}]   ;;  %s1072_s3 = inlined_call_operand.vmem [shape: bf16[128,64], index: 3, kind: input, shape index: {}]   ;;  %s1073_s4 = inlined_call_operand.vmem [shape: f32[1,64], index: 4, kind: input, shape index: {}]   ;;  %s1074_s5 = inlined_call_operand.vmem [shape: bf16[1,64], index: 5, kind: input, shape index: {}]   ;;  %s1075_s6 = inlined_call_operand.<no memory space> [shape: f32[1,1], index: 6, kind: input, shape index: {}]   ;;  %s1076_s7 = inlined_call_operand.hbm [shape: f32[2,1,128], index: 7, kind: output, shape index: {}]  }
   0x1   :  { %v12_v0 = vstv %s1075_s6 }
   0x2   :  { %13 = vst [vmem:[#allocation2] sm:$0x1] %v12_v0 }
   0x3   :  { %14 = vsyncpa [#allocation4], 0 }
   0x4   :  { %16 = vsyncpa [#allocation4 + $0x1], 0  ;;  %s911_s26 = smov 0   ;;  %s913_s27 = smov 0  }
   0x5   :  { %s915_s28 = smov 0   ;;  %s917_s29 = smov 0  }
   0x6 LB: > { %s932_s6 = sadd.s32 4294967295, %s865_s29   ;;  %s690_s30 = sadd.s32 4294967294, %s865_s29   ;;  %s865_s29 = sphi %s917_s29, %s1082_s29   ;;  %s861_s28 = sphi %s915_s28, %s1081_s28   ;;  %s857_s27 = sphi %s913_s27, %s1080_s27   ;;  %s853_s26 = sphi %s911_s26, %s1079_s26  }
   0x7   : > { %s936_s8 = sadd.s32 1, %s865_s29   ;;  %s181_s9 = sadd.s32 1, %s861_s28 }
   0x8   : > { %s178_s10 = ssub.s32 %s865_s29, %s936_s8  ;;  %p191_p0 = scmp.ne.s32.totalorder %s861_s28, %s857_s27 }
   0x9   : > { %p179_p1 = scmp.eq.s32.totalorder %s178_s10, 0  ;;  %p192_p2 = scmp.eq.s32.totalorder %s932_s6, 1 }
   0xa   : > { %p197_p3 = scmp.ne.s32.totalorder %s857_s27, %s853_s26  ;;  %p198_p4 = scmp.eq.s32.totalorder %s690_s30, 1 }
   0xb   : > { %s947_s11 = scalar_select %p179_p1, %s861_s28, %s181_s9  }
   0xc   : > { %p949_p5 = por %p192_p2, %p191_p0  ;;  %p953_p6 = por %p198_p4, %p197_p3 }
   0xd   : > { %p693_p7 = scmp.ge.s32.totalorder %s865_s29, 1  ;;  %p243_p8 = scmp.lt.s32.totalorder %s865_s29, 3 }
   0xf   : > { %p244_p9 = pnand %p693_p7, %p243_p8 }
  0x10   : > { %s694_s16 = sshll.u32 (!%p244_p9), %s932_s6, 4  ;;  %s272_s10 = sand.u32 (!%p244_p9), 1, %s857_s27  }
  0x11   : > { %247 = sbr.rel (%p244_p9) target bundleno = 655 (0x28f), region = 48  ;;  %p275_p10 = scmp.lt.s32.totalorder (!%p244_p9), %s694_s16, 31 }
  0x12   : > { %s623_s21 = scalar_lea.sflag (!%p244_p9), [#allocation4], %s272_s10 }
  0x16   : > { %v305_v1 = vld [vmem:[%s1070_s1] sm:$0xf]  ;;  %vm335_vm0 = vcmask 1043456   ;;  %s1084_s16 = smov (!%p275_p10, %s694_s16), 31  ;;  %vm310_vm1 = vcmask 64512   ;;  %v747_v18 = vld [vmem:[%s1072_s3 + $0x38] sm:$0xff] }
  0x17   : > { %v337_v2 = vsel %vm335_vm0, %v305_v1, 0  ;;  %s695_s17 = sshll.u32 %s1084_s16, 3  ;;  %480 = vmatpush.bf16.msra.mxu1 %v747_v18  ;;  %748 = vmatpush.bf16.msra.mxu3 %v747_v18  ;;  %v746_v22 = vld [vmem:[%s1072_s3 + $0x30] sm:$0xff]  ;;  %v745_v23 = vld [vmem:[%s1072_s3 + $0x28] sm:$0xff]  ;;  %v744_v24 = vld [vmem:[%s1072_s3 + $0x20] sm:$0xff]  ;;  %vm561_vm2 = vcmask 523264   ;;  %s631_s16 = scalar_lea.hbm %s1076_s7, %s932_s6 }
  0x18   : > { %346 = vmatpush.bf16.msra.mxu0 %v337_v2  ;;  %s966_s20 = scalar_lea.vmem %s1069_s0, %s695_s17  ;;  %v743_v27 = vld [vmem:[%s1072_s3 + $0x18] sm:$0xff]  ;;  %v742_v29 = vld [vmem:[%s1072_s3 + $0x10] sm:$0xff]  ;;  %v741_v30 = vld [vmem:[%s1072_s3 + $0x8] sm:$0xff]  ;;  %s273_s17 = scalar_lea.vmem [#allocation3], %s272_s10 }
  0x19   : > { %v281_v3 = vld [vmem:[%s966_s20] sm:$0xff]  ;;  %v282_v4 = vld [vmem:[%s966_s20 + $0x8] sm:$0xff]  ;;  %v283_v6 = vld [vmem:[%s966_s20 + $0x10] sm:$0xff]  ;;  %s633_s18 = sshll.u32 %s273_s17, 4  ;;  %s635_s19 = sshll.u32 %s631_s16, 4  ;;  %s634_s18 = int_to_ptr.vmem [resolvable:$true] %s633_s18  ;;  %s636_s19 = int_to_ptr.hbm [resolvable:$true] %s635_s19 }
  0x1a   : > { %v297_v5 = vpack.c.bf16 %v282_v4, %v281_v3  ;;  %v284_v7 = vld [vmem:[%s966_s20 + $0x18] sm:$0xff]  ;;  %v285_v9 = vld [vmem:[%s966_s20 + $0x20] sm:$0xff]  ;;  %v286_v10 = vld [vmem:[%s966_s20 + $0x28] sm:$0xff]  ;;  %s817_s6 = sshra.s32 %s636_s19, 4  ;;  %s818_s6 = int_to_ptr.hbm [resolvable:$true] %s817_s6 }
  0x1b   : > { %v298_v8 = vpack.c.bf16 %v284_v7, %v283_v6  ;;  %v299_v11 = vpack.c.bf16 %v286_v10, %v285_v9  ;;  %v287_v12 = vld [vmem:[%s966_s20 + $0x30] sm:$0xff]  ;;  %v288_v13 = vld [vmem:[%s966_s20 + $0x38] sm:$0xff]  ;;  %v289_v15 = vld [vmem:[%s966_s20 + $0x40] sm:$0xff]  ;;  %481 = vmatpush.bf16.msra.mxu1 %v746_v22  ;;  %749 = vmatpush.bf16.msra.mxu3 %v746_v22  ;;  %s819_s22 = scalar_lea.hbm %s818_s6, 1  ;;  %p824_p0 = scmp.lt.s32.totalorder %s818_s6, %s1076_s7 }
  0x1c   : > { %696 = vmatmul.msk.bf16.vlgmr.msra.gmra.mxu0 %vm310_vm1, %v297_v5  ;;  %v300_v14 = vpack.c.bf16 %v288_v13, %v287_v12  ;;  %v290_v16 = vld [vmem:[%s966_s20 + $0x48] sm:$0xff]  ;;  %v291_v19 = vld [vmem:[%s966_s20 + $0x50] sm:$0xff]  ;;  %v292_v20 = vld [vmem:[%s966_s20 + $0x58] sm:$0xff]  ;;  %p820_p11 = scmp.ne.s32.totalorder %s818_s6, %s819_s22 }
  0x1d   : > { %v301_v17 = vpack.c.bf16 %v290_v16, %v289_v15  ;;  %v302_v21 = vpack.c.bf16 %v292_v20, %v291_v19  ;;  %v293_v25 = vld [vmem:[%s966_s20 + $0x60] sm:$0xff]  ;;  %v294_v26 = vld [vmem:[%s966_s20 + $0x68] sm:$0xff]  ;;  %v295_v32 = vld [vmem:[%s966_s20 + $0x70] sm:$0xff] }
  0x1e   : > { %v303_v28 = vpack.c.bf16 %v294_v26, %v293_v25  ;;  %v740_v31 = vld [vmem:[%s1072_s3] sm:$0xff]  ;;  %v296_v33 = vld [vmem:[%s966_s20 + $0x78] sm:$0xff]  ;;  %p821_p12 = pnand %p820_p11, %p949_p5  ;;  %s823_s20 = scalar_lea.hbm %s1076_s7, 2 }
  0x1f   : > { %482 = vmatpush.bf16.msra.mxu1 %v745_v23  ;;  %750 = vmatpush.bf16.msra.mxu3 %v745_v23  ;;  %v304_v34 = vpack.c.bf16 %v296_v33, %v295_v32  ;;  %v797_v36 = vld [vmem:[%s1071_s2] ss:$0 sm:$0xff]  ;;  %p825_p1 = scmp.lt.s32.totalorder %s823_s20, %s819_s22 }
  0x20   : > { %p822_p13 = pneg %p821_p12 }
  0x21   : > { %p826_p2 = por %p825_p1, %p824_p0 }
  0x23   : > { %483 = vmatpush.bf16.msra.mxu1 %v744_v24  ;;  %751 = vmatpush.bf16.msra.mxu3 %v744_v24  ;;  %p827_p3 = pnand %p826_p2, %p822_p13 }
  0x27   : > { %484 = vmatpush.bf16.msra.mxu1 %v743_v27  ;;  %752 = vmatpush.bf16.msra.mxu3 %v743_v27 }
  0x2b   : > { %485 = vmatpush.bf16.msra.mxu1 %v742_v29  ;;  %753 = vmatpush.bf16.msra.mxu3 %v742_v29  ;;  %v798_v29 = vld [vmem:[%s1073_s4] ss:$0 sm:$0xff] }
  0x2c   : > { %697 = vmatmul.msk.bf16.gmra.mxu0 %vm310_vm1, %v298_v8 }
  0x2f   : > { %486 = vmatpush.bf16.msra.mxu1 %v741_v30  ;;  %754 = vmatpush.bf16.msra.mxu3 %v741_v30 }
  0x33   : > { %487 = vmatpush.bf16.msra.mxu1 %v740_v31  ;;  %755 = vmatpush.bf16.msra.mxu3 %v740_v31 }
  0x3c   : > { %698 = vmatmul.msk.bf16.gmra.mxu0 %vm310_vm1, %v299_v11 }
  0x4c   : > { %699 = vmatmul.msk.bf16.gmra.mxu0 %vm310_vm1, %v300_v14 }
  0x5c   : > { %700 = vmatmul.msk.bf16.gmra.mxu0 %vm310_vm1, %v301_v17 }
  0x6c   : > { %701 = vmatmul.msk.bf16.gmra.mxu0 %vm310_vm1, %v302_v21 }
  0x7c   : > { %702 = vmatmul.msk.bf16.gmra.mxu0 %vm310_vm1, %v303_v28 }
  0x8c   : > { %703 = vmatmul.msk.bf16.gmra.mxu0 %vm310_vm1, %v304_v34 }
  0x99   : > { %v348_v35 = vpop.f32.mrf.mxu0 }
  0x9a   : > { %v349_v37 = vadd.f32 %v797_v36, %v348_v35 }
  0x9c   : > { %v388_v40 = vmax.f32 %v349_v37, 0.0 }
  0xa1   : > { %v350_v38 = vpop.f32.mrf.mxu0 }
  0xa2   : > { %v351_v39 = vadd.f32 %v797_v36, %v350_v38 }
  0xa4   : > { %v389_v41 = vmax.f32 %v351_v39, 0.0 }
  0xa6   : > { %v404_v42 = vpack.c.bf16 %v389_v41, %v388_v40 }
  0xa8   : > { %488 = vmatmul.bf16.vlgmr.msra.gmra.mxu1 %v404_v42 }
  0xa9   : > { %v353_v43 = vpop.f32.mrf.mxu0 }
  0xaa   : > { %v354_v44 = vadd.f32 %v797_v36, %v353_v43 }
  0xac   : > { %v390_v47 = vmax.f32 %v354_v44, 0.0 }
  0xb1   : > { %v355_v45 = vpop.f32.mrf.mxu0 }
  0xb2   : > { %v356_v46 = vadd.f32 %v797_v36, %v355_v45 }
  0xb4   : > { %v391_v48 = vmax.f32 %v356_v46, 0.0 }
  0xb6   : > { %v405_v49 = vpack.c.bf16 %v391_v48, %v390_v47 }
  0xb8   : > { %493 = vmatmul.bf16.gmra.mxu1 %v405_v49 }
  0xb9   : > { %v358_v50 = vpop.f32.mrf.mxu0 }
  0xba   : > { %v359_v51 = vadd.f32 %v797_v36, %v358_v50 }
  0xbc   : > { %v392_v54 = vmax.f32 %v359_v51, 0.0 }
  0xc1   : > { %v360_v52 = vpop.f32.mrf.mxu0 }
  0xc2   : > { %v361_v53 = vadd.f32 %v797_v36, %v360_v52 }
  0xc4   : > { %v393_v55 = vmax.f32 %v361_v53, 0.0 }
  0xc6   : > { %v406_v56 = vpack.c.bf16 %v393_v55, %v392_v54 }
  0xc8   : > { %498 = vmatmul.bf16.gmra.mxu1 %v406_v56 }
  0xc9   : > { %v363_v57 = vpop.f32.mrf.mxu0 }
  0xca   : > { %v364_v58 = vadd.f32 %v797_v36, %v363_v57 }
  0xcc   : > { %v394_v61 = vmax.f32 %v364_v58, 0.0 }
  0xd1   : > { %v365_v59 = vpop.f32.mrf.mxu0 }
  0xd2   : > { %v366_v60 = vadd.f32 %v797_v36, %v365_v59 }
  0xd4   : > { %v395_v62 = vmax.f32 %v366_v60, 0.0 }
  0xd6   : > { %v407_v63 = vpack.c.bf16 %v395_v62, %v394_v61 }
  0xd8   : > { %503 = vmatmul.bf16.gmra.mxu1 %v407_v63 }
  0xd9   : > { %v368_v0 = vpop.f32.mrf.mxu0 }
  0xda   : > { %v369_v1 = vadd.f32 %v797_v36, %v368_v0 }
  0xdc   : > { %v396_v4 = vmax.f32 %v369_v1, 0.0 }
  0xe1   : > { %v370_v2 = vpop.f32.mrf.mxu0 }
  0xe2   : > { %v371_v3 = vadd.f32 %v797_v36, %v370_v2 }
  0xe4   : > { %v397_v5 = vmax.f32 %v371_v3, 0.0 }
  0xe6   : > { %v408_v6 = vpack.c.bf16 %v397_v5, %v396_v4 }
  0xe8   : > { %508 = vmatmul.bf16.gmra.mxu1 %v408_v6 }
  0xe9   : > { %v373_v7 = vpop.f32.mrf.mxu0 }
  0xea   : > { %v374_v8 = vadd.f32 %v797_v36, %v373_v7 }
  0xec   : > { %v398_v11 = vmax.f32 %v374_v8, 0.0 }
  0xf1   : > { %v375_v9 = vpop.f32.mrf.mxu0 }
  0xf2   : > { %v376_v10 = vadd.f32 %v797_v36, %v375_v9 }
  0xf4   : > { %v399_v12 = vmax.f32 %v376_v10, 0.0 }
  0xf6   : > { %v409_v13 = vpack.c.bf16 %v399_v12, %v398_v11 }
  0xf8   : > { %513 = vmatmul.bf16.vlgmr.msra.gmra.mxu3 %v409_v13 }
  0xf9   : > { %v378_v14 = vpop.f32.mrf.mxu0 }
  0xfa   : > { %v379_v15 = vadd.f32 %v797_v36, %v378_v14 }
  0xfc   : > { %v400_v18 = vmax.f32 %v379_v15, 0.0 }
 0x101   : > { %v380_v16 = vpop.f32.mrf.mxu0 }
 0x102   : > { %v381_v17 = vadd.f32 %v797_v36, %v380_v16 }
 0x104   : > { %v401_v19 = vmax.f32 %v381_v17, 0.0 }
 0x106   : > { %v410_v20 = vpack.c.bf16 %v401_v19, %v400_v18 }
 0x108   : > { %518 = vmatmul.bf16.gmra.mxu3 %v410_v20 }
 0x109   : > { %v383_v21 = vpop.f32.mrf.mxu0 }
 0x10a   : > { %v384_v22 = vadd.f32 %v797_v36, %v383_v21 }
 0x10c   : > { %v402_v25 = vmax.f32 %v384_v22, 0.0 }
 0x111   : > { %v385_v23 = vpop.f32.mrf.mxu0 }
 0x112   : > { %v386_v24 = vadd.f32 %v797_v36, %v385_v23 }
 0x114   : > { %v403_v26 = vmax.f32 %v386_v24, 0.0  ;;  %v554_v24 = vld [vmem:[#allocation2] sm:$0x1] }
 0x116   : > { %v411_v27 = vpack.c.bf16 %v403_v26, %v402_v25  ;;  %v867_v25 = vmov 0  }
 0x117   : > { %796 = vset.pattern.permute.xlu0 %v867_v25 }
 0x118   : > { %523 = vmatmul.bf16.gmra.mxu3 %v411_v27  ;;  %557 = vperm.xlu0 %796, %v554_v24  }
 0x125   : > { %v489_v28 = vpop.f32.mrf.mxu1 }
 0x126   : > { %v490_v30 = vadd.f32 %v798_v29, %v489_v28 }
 0x128   : > { %v529_v33 = vmax.f32 %v490_v30, 0.0 }
 0x12d   : > { %v491_v31 = vpop.f32.mrf.mxu1 }
 0x12e   : > { %v492_v32 = vadd.f32 %v798_v29, %v491_v31  ;;  %v545_v31 = vld [vmem:[%s1074_s5] sm:$0x1] }
 0x130   : > { %v530_v34 = vmax.f32 %v492_v32, 0.0 }
 0x132   : > { %v1022_v35 = vpack.c.bf16 %v530_v34, %v529_v33 }
 0x135   : > { %v494_v37 = vpop.f32.mrf.mxu1 }
 0x136   : > { %v495_v38 = vadd.f32 %v798_v29, %v494_v37 }
 0x138   : > { %v531_v40 = vmax.f32 %v495_v38, 0.0 }
 0x13d   : > { %v496_v39 = vpop.f32.mrf.mxu1 }
 0x13e   : > { %v497_v36 = vadd.f32 %v798_v29, %v496_v39 }
 0x140   : > { %v532_v41 = vmax.f32 %v497_v36, 0.0 }
 0x142   : > { %v547_v42 = vpack.c.bf16 %v532_v41, %v531_v40 }
 0x144   : > { %v569_v30 = vsel %vm561_vm2, %v547_v42, 0 }
 0x145   : > { %v499_v44 = vpop.f32.mrf.mxu1 }
 0x146   : > { %v500_v21 = vadd.f32 %v798_v29, %v499_v44 }
 0x148   : > { %v533_v26 = vmax.f32 %v500_v21, 0.0 }
 0x14d   : > { %v501_v46 = vpop.f32.mrf.mxu1 }
 0x14e   : > { %v502_v19 = vadd.f32 %v798_v29, %v501_v46 }
 0x150   : > { %v534_v22 = vmax.f32 %v502_v19, 0.0 }
 0x152   : > { %v548_v27 = vpack.c.bf16 %v534_v22, %v533_v26 }
 0x154   : > { %v572_v28 = vsel %vm561_vm2, %v548_v27, 0 }
 0x155   : > { %v504_v49 = vpop.f32.mrf.mxu1 }
 0x156   : > { %v505_v15 = vadd.f32 %v798_v29, %v504_v49 }
 0x158   : > { %v535_v18 = vmax.f32 %v505_v15, 0.0 }
 0x15d   : > { %v506_v51 = vpop.f32.mrf.mxu1 }
 0x15e   : > { %v507_v13 = vadd.f32 %v798_v29, %v506_v51 }
 0x160   : > { %v536_v16 = vmax.f32 %v507_v13, 0.0 }
 0x162   : > { %v549_v20 = vpack.c.bf16 %v536_v16, %v535_v18 }
 0x164   : > { %v575_v23 = vsel %vm561_vm2, %v549_v20, 0 }
 0x165   : > { %v509_v60 = vpop.f32.mrf.mxu1 }
 0x166   : > { %v510_v9 = vadd.f32 %v798_v29, %v509_v60 }
 0x168   : > { %v537_v12 = vmax.f32 %v510_v9, 0.0 }
 0x16d   : > { %v511_v5 = vpop.f32.mrf.mxu1 }
 0x16e   : > { %v512_v7 = vadd.f32 %v798_v29, %v511_v5 }
 0x170   : > { %v538_v10 = vmax.f32 %v512_v7, 0.0 }
 0x172   : > { %v550_v14 = vpack.c.bf16 %v538_v10, %v537_v12 }
 0x174   : > { %v578_v17 = vsel %vm561_vm2, %v550_v14, 0 }
 0x17b   : > { %v514_v43 = vpop.f32.mrf.mxu3 }
 0x17c   : > { %v515_v2 = vadd.f32 %v798_v29, %v514_v43 }
 0x17e   : > { %v539_v6 = vmax.f32 %v515_v2, 0.0 }
 0x183   : > { %v516_v45 = vpop.f32.mrf.mxu3 }
 0x184   : > { %v517_v0 = vadd.f32 %v798_v29, %v516_v45 }
 0x186   : > { %v540_v3 = vmax.f32 %v517_v0, 0.0 }
 0x188   : > { %v551_v8 = vpack.c.bf16 %v540_v3, %v539_v6 }
 0x18a   : > { %v581_v11 = vsel %vm561_vm2, %v551_v8, 0  ;;  %v558_v32 = vpop.permute.xlu0 %557 }
 0x18b   : > { %v519_v47 = vpop.f32.mrf.mxu3  ;;  %v560_v33 = vperm.slane %v558_v32, 0 }
 0x18c   : > { %v520_v58 = vadd.f32 %v798_v29, %v519_v47 }
 0x18e   : > { %v541_v63 = vmax.f32 %v520_v58, 0.0 }
 0x193   : > { %v521_v48 = vpop.f32.mrf.mxu3 }
 0x194   : > { %v522_v55 = vadd.f32 %v798_v29, %v521_v48 }
 0x196   : > { %v542_v61 = vmax.f32 %v522_v55, 0.0 }
 0x198   : > { %v552_v1 = vpack.c.bf16 %v542_v61, %v541_v63 }
 0x19a   : > { %v584_v4 = vsel %vm561_vm2, %v552_v1, 0 }
 0x19b   : > { %v524_v50 = vpop.f32.mrf.mxu3 }
 0x19c   : > { %v525_v52 = vadd.f32 %v798_v29, %v524_v50 }
 0x19e   : > { %v543_v56 = vmax.f32 %v525_v52, 0.0 }
 0x1a3   : > { %v526_v53 = vpop.f32.mrf.mxu3 }
 0x1a4   : > { %v527_v54 = vadd.f32 %v798_v29, %v526_v53  ;;  %v566_v29 = vsel %vm561_vm2, %v1022_v35, 0 }
 0x1a6   : > { %v544_v57 = vmax.f32 %v527_v54, 0.0 }
 0x1a8   : > { %v553_v59 = vpack.c.bf16 %v544_v57, %v543_v56 }
 0x1aa   : > { %v587_v62 = vsel %vm561_vm2, %v553_v59, 0 }
 0x1ab   : > { %589 = vmatpush.bf16.xpose.msra.mxu2 %v587_v62 }
 0x1b3   : > { %590 = vmatpush.bf16.xpose.msra.mxu2 %v584_v4 }
 0x1bb   : > { %591 = vmatpush.bf16.xpose.msra.mxu2 %v581_v11 }
 0x1c3   : > { %592 = vmatpush.bf16.xpose.msra.mxu2 %v578_v17 }
 0x1cb   : > { %593 = vmatpush.bf16.xpose.msra.mxu2 %v575_v23 }
 0x1d3   : > { %594 = vmatpush.bf16.xpose.msra.mxu2 %v572_v28 }
 0x1db   : > { %595 = vmatpush.bf16.xpose.msra.mxu2 %v569_v30 }
 0x1e3   : > { %596 = vmatpush.bf16.xpose.msra.mxu2 %v566_v29 }
 0x1ea   : > { %736 = vmatmul.msk.bf16.vlgmr.msra.gmra.mxu2 %vm561_vm2, %v545_v31 }
 0x26d   : > { %v598_v34 = vpop.f32.mrf.mxu2 }
 0x26e   : > { %v599_v37 = vadd.f32 %v598_v34, %v560_v33 }
 0x270   : > { %v737_v38 = vmul.f32 -1.442695, %v599_v37 }
 0x272   : > { %799 = vpow2.f32 %v737_v38 }
 0x275   : > { %v600_v39 = vpop.f32.mrf.mxu2 }
 0x278   : > { %v800_v36 = vpop.eup %799 }
 0x279   : > { %v605_v40 = vadd.f32 1.0, %v800_v36 }
 0x27b   : > { %801 = vrcp.f32 %v605_v40  ;;  %v617_v43 = vand.u32 2147483648, %v605_v40  ;;  %v615_v45 = vand.u32 2147483647, %v605_v40  ;;  %vm611_vm4 = vweird.f32 %v605_v40 }
 0x27d   : > { %v618_v47 = vor.u32 1.1754944e-38, %v617_v43  ;;  %vm616_vm6 = vcmp.eq.f32.partialorder %v615_v45, 8.507059e+37 }
 0x281   : > { %v802_v41 = vpop.eup %801 }
 0x282   : > { %v607_v35 = vmul.f32 %v802_v41, %v605_v40  ;;  %vm612_vm3 = vweird.f32 %v802_v41 }
 0x283   : > { %vm613_vm5 = vmor %vm611_vm4, %vm612_vm3 }
 0x284   : > { %v608_v42 = vsub.f32 1.0, %v607_v35 }
 0x286   : > { %v609_v44 = vmul.f32 %v802_v41, %v608_v42 }
 0x288   : > { %v610_v46 = vadd.f32 %v802_v41, %v609_v44 }
 0x28a   : > { %v614_v48 = vsel %vm613_vm5, %v802_v41, %v610_v46 }
 0x28b   : > { %v619_v49 = vsel %vm616_vm6, %v618_v47, %v614_v48 }
 0x28c   : > { %621 = vst [vmem:[%s273_s17] sm:$0x1] %v619_v49 }
 0x28d   : > { %830 = shalt.err (!%p827_p3)
}
 0x28e   : > { %756 = dma.vmem_to_hbm [thread:$0]  (%p949_p5), %s634_s18, 16, %s636_s19, %s623_s21  }
 0x28f PF: > { %p762_p4 = scmp.ge.s32.totalorder %s865_s29, 2  ;;  %s647_s9 = sand.u32 1, %s853_s26  }
 0x290   : > { %s648_s10 = scalar_lea.sflag [#allocation4], %s647_s9 }
 0x291   : > { %p759_p7 = pnand %p762_p4, %p953_p6 }
 0x293   : > { %p760_p8 = pneg %p759_p7 }
 0x295   : > { %848 = dma.done.wait (%p760_p8), %s648_s10, 16  }
 0x296   : > { %850 = vsyncadd (%p760_p8), %s648_s10, 4294967280  ;;  %p19_p9 = scmp.ge.s32.totalorder %s936_s8, 4   ;;  %s1079_s26 = smov %s857_s27 }
 0x297   : > { %s1080_s27 = smov %s861_s28  ;;  %s1081_s28 = smov %s947_s11 }
 0x298   : > { %s1082_s29 = smov %s936_s8  ;;  %21 = sbr.rel (!%p19_p9) target bundleno = 6 (0x6), region = 83 }
 0x29d   :  { %653 = vsyncpa [#allocation4], 1 }
 0x29e   :  { %655 = vsyncpa [#allocation4 + $0x1], 1 }

</bundles_post_ra>
